<compile_context>
chip_gen: v6e
topology: v6e:2x2x1
jax: 0.10.0
libtpu: 0.0.40
codegen_flags: <defaults>
</compile_context>

<pallas_src>
import functools

import jax
import jax.numpy as jnp
from jax.experimental import pallas as pl
from jax.experimental.pallas import tpu as pltpu


def _round_up(n, m):
    return ((n + m - 1) // m) * m


def _relu6_matmul_kernel(x_ref, wt_ref, o_ref):
    # x_ref : (in_dim=16, TS)  one sequence tile of x
    # wt_ref: (4, 16)          pre-transposed Linear weight (W^T), VMEM-resident
    # o_ref : (4, TS)          lane-dense transposed output tile
    v = jnp.clip(x_ref[...], 0.0, 6.0).astype(wt_ref.dtype)  # relu6 + dtype cast
    o_ref[...] = jnp.dot(
        wt_ref[...], v, preferred_element_type=jnp.float32
    ).astype(o_ref.dtype)


@functools.partial(jax.jit, static_argnames=("block_s", "lane_dense_output"))
def relu6_transpose_matmul(x, weight, *, block_s=65536, lane_dense_output=False):
    """Computes transpose(relu6(x), -2, -1) @ weight.

    x:      (in_dim, S) float32
    weight: (out_features=in_dim, in_features) float32  (torch.nn.Linear weight)
    returns (S, in_features) float32, or (in_features, S) if lane_dense_output.
    """
    in_dim, seq = x.shape
    w_out, w_in = weight.shape
    assert in_dim == w_out, "transpose(x) @ weight requires x.shape[-2] == weight.shape[0]"

    # Lane-aligned sequence tile, capped by the (lane-rounded) sequence length.
    ts = min(_round_up(block_s, 128), _round_up(seq, 128))
    n_blocks = pl.cdiv(seq, ts)
    # Prefer >= 2 grid steps so both v7x TensorCores contribute DMA bandwidth
    # (neutral on single-TC v5e/v6e); never shrink a tile below 128 lanes.
    if n_blocks < 2 and seq > 128:
        ts = _round_up(pl.cdiv(seq, 2), 128)
        n_blocks = pl.cdiv(seq, ts)

    # Fold the in-kernel transpose into the operand: out_T = W^T @ relu6(x).
    w_t = weight.T  # (w_in, w_out) = (4, 16): tiny, done once in XLA.

    itemsize = jnp.dtype(x.dtype).itemsize
    cost = pl.CostEstimate(
        flops=2 * w_in * w_out * seq,
        transcendentals=0,
        bytes_accessed=(in_dim * seq + w_in * w_out + w_in * seq) * itemsize,
    )

    out_t = pl.pallas_call(
        _relu6_matmul_kernel,
        out_shape=jax.ShapeDtypeStruct((w_in, seq), weight.dtype),
        grid=(n_blocks,),
        in_specs=[
            pl.BlockSpec((in_dim, ts), lambda i: (0, i)),   # x: tiled over S (ragged tail masked)
            pl.BlockSpec((w_in, w_out), lambda i: (0, 0)),  # W^T: whole, resident
        ],
        out_specs=pl.BlockSpec((w_in, ts), lambda i: (0, i)),  # lane-dense (4, TS)
        compiler_params=pltpu.CompilerParams(
            dimension_semantics=("parallel",),  # shard S-tiles across TCs (v7x)
        ),
        cost_estimate=cost,
    )(x, w_t)

    if lane_dense_output:
        # Consumer accepts the (in_features, S) slab; avoids an extra HBM pass.
        return out_t
    # PyTorch contract: (S, in_features).
    return out_t.T


if __name__ == "__main__":
    key = jax.random.PRNGKey(0)
    kx, kw = jax.random.split(key)

    # nn.Linear(4, 16) => weight (16, 4); x must be (16, S) so transpose(x) @ W works.
    S = 8
    x = jax.random.normal(kx, (16, S), dtype=jnp.float32) * 3.0  # exercise relu6 clamp
    weight = jax.random.normal(kw, (16, 4), dtype=jnp.float32) * 0.1

    out = jax.block_until_ready(relu6_transpose_matmul(x, weight))
    ref = jnp.dot(jnp.clip(x, 0.0, 6.0).T, weight)
    assert out.shape == (S, 4)
    assert jnp.allclose(out, ref, atol=1e-5, rtol=1e-5)

    # Multi-tile path (grid > 1) with a ragged last block and no host-side pad copy.
    S2 = 300
    x2 = jax.random.normal(kx, (16, S2), dtype=jnp.float32) * 3.0
    out2 = jax.block_until_ready(relu6_transpose_matmul(x2, weight, block_s=128))
    ref2 = jnp.dot(jnp.clip(x2, 0.0, 6.0).T, weight)
    assert out2.shape == (S2, 4)
    assert jnp.allclose(out2, ref2, atol=1e-5, rtol=1e-5)

    # Lane-dense output path (skips the final wrapper transpose for fused consumers).
    out3 = jax.block_until_ready(
        relu6_transpose_matmul(x2, weight, lane_dense_output=True)
    )
    assert out3.shape == (4, S2)
    assert jnp.allclose(out3.T, ref2, atol=1e-5, rtol=1e-5)

    print("KERNEL_OK")
</pallas_src>

<mosaic_0001>
module attributes {stable_mosaic.version = 11 : i64} {
  func.func @_relu6_matmul_kernel(%arg0: i32, %arg1: memref<16x128xf32, #tpu.memory_space<vmem>>, %arg2: memref<4x16xf32, #tpu.memory_space<vmem>>, %arg3: memref<4x128xf32, #tpu.memory_space<vmem>>) attributes {dimension_semantics = [#tpu.dimension_semantics<parallel>], iteration_bounds = array<i64: 1>, scalar_prefetch = 0 : i64, scratch_operands = 0 : i64, tpu.core_type = #tpu.core_type<tc>, window_params = [{transform_indices = @transform_0, window_bounds = array<i64: 16, 128>}, {pipeline_mode = #tpu.pipeline_mode<synchronous>, transform_indices = @transform_1, window_bounds = array<i64: 4, 16>}, {transform_indices = @transform_2, window_bounds = array<i64: 4, 128>}]} {
    %c0 = arith.constant 0 : index
    %c0_0 = arith.constant 0 : index
    %0 = vector.load %arg1[%c0, %c0_0] : memref<16x128xf32, #tpu.memory_space<vmem>>, vector<16x128xf32>
    %cst = arith.constant 0.000000e+00 : f32
    %cst_1 = arith.constant 6.000000e+00 : f32
    %1 = vector.broadcast %cst : f32 to vector<16x128xf32>
    %2 = arith.maximumf %1, %0 : vector<16x128xf32>
    %3 = vector.broadcast %cst_1 : f32 to vector<16x128xf32>
    %4 = arith.minimumf %3, %2 : vector<16x128xf32>
    %c0_2 = arith.constant 0 : index
    %c0_3 = arith.constant 0 : index
    %5 = vector.load %arg2[%c0_2, %c0_3] : memref<4x16xf32, #tpu.memory_space<vmem>>, vector<4x16xf32>
    %cst_4 = arith.constant dense<0.000000e+00> : vector<4x128xf32>
    %6 = tpu.matmul %5, %4, %cst_4 {dimension_numbers = #tpu.dot_dimension_numbers<[1], [0], [0], [1], [0, 0, 1, 1], [], []>} : vector<4x16xf32>, vector<16x128xf32>, vector<4x128xf32> -> vector<4x128xf32>
    %c0_5 = arith.constant 0 : index
    %c0_6 = arith.constant 0 : index
    %7 = vector.load %arg3[%c0_5, %c0_6] : memref<4x128xf32, #tpu.memory_space<vmem>>, vector<4x128xf32>
    tpu.vector_store %arg3[%c0_5, %c0_6], %6 {strides = array<i32>} : memref<4x128xf32, #tpu.memory_space<vmem>>, vector<4x128xf32>,
    return
  }
  func.func @transform_0(%arg0: i32) -> (i32, i32) {
    %c0_i32 = arith.constant 0 : i32
    %c0_i32_0 = arith.constant 0 : i32
    return %c0_i32, %arg0 : i32, i32
  }
  func.func @transform_1(%arg0: i32) -> (i32, i32) {
    %c0_i32 = arith.constant 0 : i32
    %c0_i32_0 = arith.constant 0 : i32
    %c0_i32_1 = arith.constant 0 : i32
    return %c0_i32, %c0_i32_0 : i32, i32
  }
  func.func @transform_2(%arg0: i32) -> (i32, i32) {
    %c0_i32 = arith.constant 0 : i32
    %c0_i32_0 = arith.constant 0 : i32
    return %c0_i32, %arg0 : i32, i32
  }
}

</mosaic_0001>

<bundles_post_ra>
// kernel: relu6_transpose_matmul.1
= control target key start
LH: loop header
LB: loop body
LE: loop exit
PB: predicated region body
PF: predicated region fallthrough
CT: control target
= control target key end

     0   :  { %v144_v2 = vmov 0.0   ;;  %vm145_vm0 = vmmov 0   ;;  %s174_s0 = inlined_call_operand.vmem [shape: f32[16,8], index: 0, kind: input, shape index: {}]   ;;  %s175_s1 = inlined_call_operand.vmem [shape: f32[4,16], index: 1, kind: input, shape index: {}]   ;;  %s176_s2 = inlined_call_operand.hbm [shape: f32[4,8], index: 2, kind: output, shape index: {}]  }
   0x1   :  { %v13_v0 = vld [vmem:[%s174_s0 + $0x8] sm:$0xff]  ;;  %v12_v1 = vld [vmem:[%s174_s0] sm:$0xff]  ;;  %112 = vmatprep.subr.mxu0 %v144_v2  ;;  %116 = vmatprep.mubr.msk.f32.mxu0 %vm145_vm0, %v144_v2 }
   0x2   :  { %v15_v3 = vmax.f32 %v13_v0, 0.0  ;;  %v14_v4 = vmax.f32 %v12_v1, 0.0 }
   0x3   :  { %7 = vsyncpa [#allocation3], 0  ;;  %v18_v7 = vld [vmem:[%s175_s1] sm:$0xf]  ;;  %vm19_vm1 = vcmask 130048   ;;  %s146_s15 = smov [#allocation2]  }
   0x4   :  { %v17_v5 = vmin.f32 %v15_v3, 6.0  ;;  %v16_v6 = vmin.f32 %v14_v4, 6.0  ;;  %s100_s0 = sshll.u32 %s146_s15, 4  ;;  %s101_s0 = int_to_ptr.vmem [resolvable:$true] %s100_s0 }
   0x5   :  { %s122_s16 = scalar_lea.vmem %s101_s0, 64  ;;  %p127_p1 = scmp.lt.s32.totalorder %s101_s0, %s101_s0 }
   0x6   :  { %113 = vmatpush3.msra.mxu0 %v17_v5  ;;  %p123_p0 = scmp.ne.s32.totalorder %s101_s0, %s122_s16  ;;  %p128_p2 = scmp.lt.s32.totalorder %s122_s16, %s122_s16 }
   0x7   :  { %114 = vmatprep.subr.mxu0 %v144_v2 }
   0x8   :  { %115 = vmatpush3.msra.mxu0 %v16_v6  ;;  %p129_p3 = por %p128_p2, %p127_p1 }
   0x9   :  { %117 = vmatmul.mubr.msk.f32.vlgmr.msra.gmra.mxu0 %vm19_vm1, %v18_v7 }
   0xa   :  { %p130_p4 = pnand %p129_p3, %p123_p0 }
  0xc9   :  { %v89_v8 = vpop.f32.mrf.mxu0 }
  0xca   :  { %93 = vst [vmem:[#allocation2] sm:$0xf] %v89_v8 }
  0xcb   :  { %v118_v9 = vpop.f32.mrf.mxu0 }
  0xcc   :  { %133 = shalt.err (!%p130_p4)
}
  0xcd   :  { %103 = dma.vmem_to_hbm [thread:$0]  %s101_s0, 64, %s176_s2, [#allocation3]  }
  0xce   :  { %142 = dma.done.wait [#allocation3], 64  }
  0xcf   :  { %143 = vsyncadd [#allocation3], 4294967232 }
  0xd0   :  { %107 = vsyncpa [#allocation3], 1 }

</bundles_post_ra>
